<compile_context>
chip_gen: v5e
topology: v5e:2x2
jax: 0.10.0
libtpu: 0.0.40
codegen_flags: <defaults>
</compile_context>

<pallas_src>
import functools

import jax
import jax.numpy as jnp
from jax.experimental import pallas as pl
from jax.experimental.pallas import tpu as pltpu

EPS = 1e-5


# --------------------- weight folding (host side, hoisted out of jit) --------
def fold_conv3x3(w_oihw, width):
    """OIHW (P, C, 3, 3) -> (3*W*C, W*P) bf16: 3 H-taps, tri-banded over W.

    Row index = kh*(W*C) + v*C + c, col index = w*P + p, value =
    w[p, c, kh, (v-w)+1] when |v-w| <= 1 else 0.  Conv padding in W is implicit
    (edge columns simply have only two contributing bands)."""
    p_out, c_in = w_oihw.shape[:2]
    w_t = jnp.transpose(w_oihw, (2, 3, 1, 0)).astype(jnp.float32)   # (kh, kw, C, P)
    v = jnp.arange(width)[:, None]
    w = jnp.arange(width)[None, :]
    dw = v - w
    valid = (jnp.abs(dw) <= 1).astype(jnp.float32)
    band = jax.nn.one_hot(jnp.clip(dw + 1, 0, 2), 3) * valid[..., None]  # (W, W, 3)
    folded = jnp.einsum("vwk,dkcp->dvcwp", band, w_t)
    return folded.reshape(3 * width * c_in, width * p_out).astype(jnp.bfloat16)


def fold_conv1x1(w_oihw, width):
    """OIHW (P, C, 1, 1) -> (W*C, W*P) bf16 block-diagonal over W."""
    p_out, c_in = w_oihw.shape[:2]
    w_t = w_oihw[:, :, 0, 0].T.astype(jnp.float32)                  # (C, P)
    eye = jnp.eye(width, dtype=jnp.float32)
    folded = jnp.einsum("cp,vw->vcwp", w_t, eye)
    return folded.reshape(width * c_in, width * p_out).astype(jnp.bfloat16)


def prepare_params(params, width):
    """Fold conv weights ONCE (outside the per-forward jit) and cache them."""
    return {
        "w1f": fold_conv3x3(params["w1"], width),
        "w2f": fold_conv3x3(params["w2"], width),
        "wdf": fold_conv1x1(params["wd"], width),
        "g1": params["g1"], "b1": params["b1"],
        "g2": params["g2"], "b2": params["b2"],
        "gd": params["gd"], "bd": params["bd"],
    }


# ------------------------------- in-kernel helpers ----------------------------
def _conv3x3_banded(xb, w_ref, l):
    """xb: (H, l) bf16 lane-dense [w, c]; w_ref: (3*l, W*P) bf16 folded weight.

    Three tap matmuls (kh = 0,1,2) with f32 accumulation; H padding handled by
    zero-filled edge rows (tiny bf16 concats on the sublane axis)."""
    zrow = jnp.zeros_like(xb[:1])
    t_up = jnp.concatenate([zrow, xb[:-1]], axis=0)       # out[h] uses x[h-1]
    t_dn = jnp.concatenate([xb[1:], zrow], axis=0)        # out[h] uses x[h+1]
    y = jnp.dot(t_up, w_ref[0:l, :], preferred_element_type=jnp.float32)
    y = y + jnp.dot(xb, w_ref[l:2 * l, :], preferred_element_type=jnp.float32)
    y = y + jnp.dot(t_dn, w_ref[2 * l:3 * l, :], preferred_element_type=jnp.float32)
    return y


def _row_stats(y):
    """(H, L) f32 -> (1, 2, L) f32: per-lane [sum, sum of squares] over rows."""
    s = jnp.sum(y, axis=0, keepdims=True)
    ss = jnp.sum(y * y, axis=0, keepdims=True)
    return jnp.concatenate([s, ss], axis=0)[None]


# ----------------------------------- kernels ----------------------------------
def _stage1_kernel(x_ref, w1_ref, wd_ref, y1_ref, yd_ref, st1_ref, std_ref,
                   *, cin, width):
    # One image per grid step: conv1 (3x3) + 1x1 downsample conv + BN partials.
    xb = x_ref[0].astype(jnp.bfloat16)                    # (H, W*Cin) bf16
    y1 = _conv3x3_banded(xb, w1_ref, width * cin)         # (H, W*P) f32
    yd = jnp.dot(xb, wd_ref[...], preferred_element_type=jnp.float32)
    y1_ref[0] = y1
    yd_ref[0] = yd
    st1_ref[...] = _row_stats(y1)
    std_ref[...] = _row_stats(yd)


def _stage2_kernel(y1_ref, sc1_ref, sh1_ref, w2_ref, y2_ref, st2_ref,
                   *, planes, width):
    # BN1 (precomputed affine) + ReLU + conv2 (3x3) + BN2 partials.
    h1 = jnp.maximum(y1_ref[0] * sc1_ref[...] + sh1_ref[...], 0.0)
    h1b = h1.astype(jnp.bfloat16)
    y2 = _conv3x3_banded(h1b, w2_ref, width * planes)
    y2_ref[0] = y2
    st2_ref[...] = _row_stats(y2)


def _stage3_kernel(y2_ref, yd_ref, sc2_ref, sh2_ref, scd_ref, shd_ref, out_ref):
    # BN2 + downsample-BN + residual add + ReLU; full 128-lane store.
    main = y2_ref[0] * sc2_ref[...] + sh2_ref[...]
    idn = yd_ref[0] * scd_ref[...] + shd_ref[...]
    out_ref[0] = jnp.maximum(main + idn, 0.0)


# ------------------------------- JAX glue (tiny) -------------------------------
def _bn_affine(stats, gamma, beta, count, width, planes):
    """Reduce per-image per-lane [sum, sumsq] to per-channel affine scale/shift,
    then broadcast back to the lane-dense layout.  ~128-element vectors only."""
    s = stats[:, 0, :].sum(axis=0).reshape(width, planes).sum(axis=0)    # (P,)
    ss = stats[:, 1, :].sum(axis=0).reshape(width, planes).sum(axis=0)   # (P,)
    mean = s / count
    var = jnp.maximum(ss / count - mean * mean, 0.0)       # clamp (review note)
    scale_c = gamma * jax.lax.rsqrt(var + EPS)
    shift_c = beta - mean * scale_c
    scale = jnp.tile(scale_c, width).reshape(1, width * planes)
    shift = jnp.tile(shift_c, width).reshape(1, width * planes)
    return scale, shift


# --------------------------------- forward ------------------------------------
@functools.partial(jax.jit, static_argnames=("cin", "planes", "width", "height"))
def resblock_forward_lane(x_lane, folded, *, cin, planes, width, height):
    """Lane-dense forward: x_lane (N, H, W*Cin) f32 -> (N, H, W*P) f32."""
    n = x_lane.shape[0]
    wp = width * planes
    parallel = pltpu.CompilerParams(dimension_semantics=("parallel",))

    img_in = pl.BlockSpec((1, height, width * cin), lambda i: (i, 0, 0))
    img_p = pl.BlockSpec((1, height, wp), lambda i: (i, 0, 0))
    stat = pl.BlockSpec((1, 2, wp), lambda i: (i, 0, 0))

    def bcast(shape):
        nd = len(shape)
        return pl.BlockSpec(shape, lambda i: (0,) * nd)

    # ---- stage 1: conv1 + 1x1 downsample conv + per-image BN partial stats ----
    y1, yd, st1, std = pl.pallas_call(
        functools.partial(_stage1_kernel, cin=cin, width=width),
        grid=(n,),
        in_specs=[img_in, bcast(folded["w1f"].shape), bcast(folded["wdf"].shape)],
        out_specs=(img_p, img_p, stat, stat),
        out_shape=(
            jax.ShapeDtypeStruct((n, height, wp), jnp.float32),
            jax.ShapeDtypeStruct((n, height, wp), jnp.float32),
            jax.ShapeDtypeStruct((n, 2, wp), jnp.float32),
            jax.ShapeDtypeStruct((n, 2, wp), jnp.float32),
        ),
        compiler_params=parallel,
    )(x_lane, folded["w1f"], folded["wdf"])

    count = float(n * height * width)
    sc1, sh1 = _bn_affine(st1, folded["g1"], folded["b1"], count, width, planes)

    # ---- stage 2: BN1 + ReLU + conv2 + per-image BN partial stats ----
    y2, st2 = pl.pallas_call(
        functools.partial(_stage2_kernel, planes=planes, width=width),
        grid=(n,),
        in_specs=[img_p, bcast((1, wp)), bcast((1, wp)), bcast(folded["w2f"].shape)],
        out_specs=(img_p, stat),
        out_shape=(
            jax.ShapeDtypeStruct((n, height, wp), jnp.float32),
            jax.ShapeDtypeStruct((n, 2, wp), jnp.float32),
        ),
        compiler_params=parallel,
    )(y1, sc1, sh1, folded["w2f"])

    sc2, sh2 = _bn_affine(st2, folded["g2"], folded["b2"], count, width, planes)
    scd, shd = _bn_affine(std, folded["gd"], folded["bd"], count, width, planes)

    # ---- stage 3: BN2 + downsample BN + residual add + ReLU ----
    out = pl.pallas_call(
        _stage3_kernel,
        grid=(n,),
        in_specs=[img_p, img_p, bcast((1, wp)), bcast((1, wp)),
                  bcast((1, wp)), bcast((1, wp))],
        out_specs=img_p,
        out_shape=jax.ShapeDtypeStruct((n, height, wp), jnp.float32),
        compiler_params=parallel,
    )(y2, yd, sc2, sh2, scd, shd)
    return out


def resblock_forward(x_nchw, folded, *, planes):
    """NCHW boundary wrapper.  In a full network, keep activations lane-dense
    across consecutive ResBlocks and call resblock_forward_lane directly."""
    n, cin, h, w = x_nchw.shape
    x_lane = jnp.transpose(x_nchw, (0, 2, 3, 1)).reshape(n, h, w * cin)
    out_lane = resblock_forward_lane(x_lane, folded, cin=cin, planes=planes,
                                     width=w, height=h)
    return jnp.transpose(out_lane.reshape(n, h, w, planes), (0, 3, 1, 2))


# ------------------------------ pure-JAX reference ----------------------------
def resblock_reference(x, params):
    """Pure-JAX reference (NCHW, f32), mirrors the PyTorch forward in training mode."""
    def conv(x, w, pad):
        return jax.lax.conv_general_dilated(
            x, w, window_strides=(1, 1), padding=[(pad, pad), (pad, pad)],
            dimension_numbers=("NCHW", "OIHW", "NCHW"))

    def bn(x, g, b):
        mean = x.mean(axis=(0, 2, 3), keepdims=True)
        var = ((x - mean) ** 2).mean(axis=(0, 2, 3), keepdims=True)
        xn = (x - mean) * jax.lax.rsqrt(var + EPS)
        return xn * g.reshape(1, -1, 1, 1) + b.reshape(1, -1, 1, 1)

    out = jax.nn.relu(bn(conv(x, params["w1"], 1), params["g1"], params["b1"]))
    out = bn(conv(out, params["w2"], 1), params["g2"], params["b2"])
    idn = bn(conv(x, params["wd"], 0), params["gd"], params["bd"])
    return jax.nn.relu(out + idn)


if __name__ == "__main__":
    # Small shapes consistent with the module: inplanes=4, planes=8, stride=1.
    N, Cin, P, H, W = 2, 4, 8, 16, 16
    key = jax.random.PRNGKey(0)
    kx, k1, k2, k3, k4, k5 = jax.random.split(key, 6)

    x = jax.random.normal(kx, (N, Cin, H, W), jnp.float32)
    params = {
        # conv weights in PyTorch OIHW layout, deterministic init
        "w1": jax.random.normal(k1, (P, Cin, 3, 3), jnp.float32) * 0.1,
        "w2": jax.random.normal(k2, (P, P, 3, 3), jnp.float32) * 0.1,
        "wd": jax.random.normal(k3, (P, Cin, 1, 1), jnp.float32) * 0.1,
        # BatchNorm affine params (PyTorch init: gamma=1, beta=0) — perturbed
        # slightly so the affine path is actually exercised.
        "g1": jnp.ones((P,), jnp.float32) + 0.05 * jax.random.normal(k4, (P,)),
        "b1": 0.05 * jax.random.normal(k5, (P,)),
        "g2": jnp.ones((P,), jnp.float32),
        "b2": jnp.zeros((P,), jnp.float32),
        "gd": jnp.ones((P,), jnp.float32),
        "bd": jnp.zeros((P,), jnp.float32),
    }

    # Fold weights ONCE (hoisted out of the per-forward jit).
    folded = prepare_params(params, W)

    out = jax.block_until_ready(resblock_forward(x, folded, planes=P))
    ref = jax.block_until_ready(resblock_reference(x, params))

    assert out.shape == (N, P, H, W)
    # Tolerance reflects bf16 MXU operands (f32 accumulation) vs. the f32 reference.
    err = float(jnp.max(jnp.abs(out - ref)))
    assert err < 5e-2, err
    print("KERNEL_OK")
</pallas_src>

<mosaic_0001>
module attributes {stable_mosaic.version = 11 : i64} {
  func.func @_stage1_kernel(%arg0: i32, %arg1: memref<1x16x64xf32, #tpu.memory_space<vmem>>, %arg2: memref<192x128xbf16, #tpu.memory_space<vmem>>, %arg3: memref<64x128xbf16, #tpu.memory_space<vmem>>, %arg4: memref<1x16x128xf32, #tpu.memory_space<vmem>>, %arg5: memref<1x16x128xf32, #tpu.memory_space<vmem>>, %arg6: memref<1x2x128xf32, #tpu.memory_space<vmem>>, %arg7: memref<1x2x128xf32, #tpu.memory_space<vmem>>) attributes {dimension_semantics = [#tpu.dimension_semantics<parallel>], iteration_bounds = array<i64: 2>, scalar_prefetch = 0 : i64, scratch_operands = 0 : i64, tpu.core_type = #tpu.core_type<tc>, window_params = [{transform_indices = @transform_0, window_bounds = array<i64: 1, 16, 64>}, {pipeline_mode = #tpu.pipeline_mode<synchronous>, transform_indices = @transform_1, window_bounds = array<i64: 192, 128>}, {pipeline_mode = #tpu.pipeline_mode<synchronous>, transform_indices = @transform_2, window_bounds = array<i64: 64, 128>}, {transform_indices = @transform_3, window_bounds = array<i64: 1, 16, 128>}, {transform_indices = @transform_4, window_bounds = array<i64: 1, 16, 128>}, {transform_indices = @transform_5, window_bounds = array<i64: 1, 2, 128>}, {transform_indices = @transform_6, window_bounds = array<i64: 1, 2, 128>}]} {
    %c0 = arith.constant 0 : index
    %c0_0 = arith.constant 0 : index
    %c0_1 = arith.constant 0 : index
    %0 = vector.load %arg1[%c0, %c0_0, %c0_1] : memref<1x16x64xf32, #tpu.memory_space<vmem>>, vector<1x16x64xf32>
    %1 = vector.shape_cast %0 : vector<1x16x64xf32> to vector<16x64xf32>
    %2 = arith.truncf %1 : vector<16x64xf32> to vector<16x64xbf16>
    %cst = arith.constant 0.000000e+00 : bf16
    %3 = vector.broadcast %cst : bf16 to vector<1x64xbf16>
    %4 = vector.extract_strided_slice %2 {offsets = [0, 0], sizes = [15, 64], strides = [1, 1]} : vector<16x64xbf16> to vector<15x64xbf16>
    %5 = tpu.concatenate %3, %4 in 0 : vector<1x64xbf16>, vector<15x64xbf16> -> vector<16x64xbf16>
    %6 = vector.extract_strided_slice %2 {offsets = [1, 0], sizes = [15, 64], strides = [1, 1]} : vector<16x64xbf16> to vector<15x64xbf16>
    %7 = tpu.concatenate %6, %3 in 0 : vector<15x64xbf16>, vector<1x64xbf16> -> vector<16x64xbf16>
    %c0_2 = arith.constant 0 : index
    %c0_3 = arith.constant 0 : index
    %8 = vector.load %arg2[%c0_2, %c0_3] : memref<192x128xbf16, #tpu.memory_space<vmem>>, vector<64x128xbf16>
    %cst_4 = arith.constant dense<0.000000e+00> : vector<16x128xf32>
    %9 = tpu.matmul %5, %8, %cst_4 {dimension_numbers = #tpu.dot_dimension_numbers<[1], [0], [0], [1], [0, 0, 1, 1], [], []>} : vector<16x64xbf16>, vector<64x128xbf16>, vector<16x128xf32> -> vector<16x128xf32>
    %c64 = arith.constant 64 : index
    %c0_5 = arith.constant 0 : index
    %10 = vector.load %arg2[%c64, %c0_5] : memref<192x128xbf16, #tpu.memory_space<vmem>>, vector<64x128xbf16>
    %cst_6 = arith.constant dense<0.000000e+00> : vector<16x128xf32>
    %11 = tpu.matmul %2, %10, %cst_6 {dimension_numbers = #tpu.dot_dimension_numbers<[1], [0], [0], [1], [0, 0, 1, 1], [], []>} : vector<16x64xbf16>, vector<64x128xbf16>, vector<16x128xf32> -> vector<16x128xf32>
    %12 = arith.addf %9, %11 : vector<16x128xf32>
    %c128 = arith.constant 128 : index
    %c0_7 = arith.constant 0 : index
    %13 = vector.load %arg2[%c128, %c0_7] : memref<192x128xbf16, #tpu.memory_space<vmem>>, vector<64x128xbf16>
    %cst_8 = arith.constant dense<0.000000e+00> : vector<16x128xf32>
    %14 = tpu.matmul %7, %13, %cst_8 {dimension_numbers = #tpu.dot_dimension_numbers<[1], [0], [0], [1], [0, 0, 1, 1], [], []>} : vector<16x64xbf16>, vector<64x128xbf16>, vector<16x128xf32> -> vector<16x128xf32>
    %15 = arith.addf %12, %14 : vector<16x128xf32>
    %c0_9 = arith.constant 0 : index
    %c0_10 = arith.constant 0 : index
    %16 = vector.load %arg3[%c0_9, %c0_10] : memref<64x128xbf16, #tpu.memory_space<vmem>>, vector<64x128xbf16>
    %cst_11 = arith.constant dense<0.000000e+00> : vector<16x128xf32>
    %17 = tpu.matmul %2, %16, %cst_11 {dimension_numbers = #tpu.dot_dimension_numbers<[1], [0], [0], [1], [0, 0, 1, 1], [], []>} : vector<16x64xbf16>, vector<64x128xbf16>, vector<16x128xf32> -> vector<16x128xf32>
    %c0_12 = arith.constant 0 : index
    %c0_13 = arith.constant 0 : index
    %c0_14 = arith.constant 0 : index
    %18 = vector.load %arg4[%c0_12, %c0_13, %c0_14] : memref<1x16x128xf32, #tpu.memory_space<vmem>>, vector<1x16x128xf32>
    %19 = vector.shape_cast %18 : vector<1x16x128xf32> to vector<16x128xf32>
    %20 = vector.shape_cast %15 : vector<16x128xf32> to vector<1x16x128xf32>
    tpu.vector_store %arg4[%c0_12, %c0_13, %c0_14], %20 {strides = array<i32>} : memref<1x16x128xf32, #tpu.memory_space<vmem>>, vector<1x16x128xf32>,
    %c0_15 = arith.constant 0 : index
    %c0_16 = arith.constant 0 : index
    %c0_17 = arith.constant 0 : index
    %21 = vector.load %arg5[%c0_15, %c0_16, %c0_17] : memref<1x16x128xf32, #tpu.memory_space<vmem>>, vector<1x16x128xf32>
    %22 = vector.shape_cast %21 : vector<1x16x128xf32> to vector<16x128xf32>
    %23 = vector.shape_cast %17 : vector<16x128xf32> to vector<1x16x128xf32>
    tpu.vector_store %arg5[%c0_15, %c0_16, %c0_17], %23 {strides = array<i32>} : memref<1x16x128xf32, #tpu.memory_space<vmem>>, vector<1x16x128xf32>,
    %cst_18 = arith.constant dense<0.000000e+00> : vector<128xf32>
    %24 = vector.multi_reduction <add>, %15, %cst_18 [0] : vector<16x128xf32> to vector<128xf32>
    %25 = vector.shape_cast %24 : vector<128xf32> to vector<1x128xf32>
    %26 = arith.mulf %15, %15 : vector<16x128xf32>
    %cst_19 = arith.constant dense<0.000000e+00> : vector<128xf32>
    %27 = vector.multi_reduction <add>, %26, %cst_19 [0] : vector<16x128xf32> to vector<128xf32>
    %28 = vector.shape_cast %27 : vector<128xf32> to vector<1x128xf32>
    %29 = tpu.concatenate %25, %28 in 0 : vector<1x128xf32>, vector<1x128xf32> -> vector<2x128xf32>
    %30 = vector.shape_cast %29 : vector<2x128xf32> to vector<1x2x128xf32>
    %c0_20 = arith.constant 0 : index
    %c0_21 = arith.constant 0 : index
    %c0_22 = arith.constant 0 : index
    %31 = vector.load %arg6[%c0_20, %c0_21, %c0_22] : memref<1x2x128xf32, #tpu.memory_space<vmem>>, vector<1x2x128xf32>
    tpu.vector_store %arg6[%c0_20, %c0_21, %c0_22], %30 {strides = array<i32>} : memref<1x2x128xf32, #tpu.memory_space<vmem>>, vector<1x2x128xf32>,
    %cst_23 = arith.constant dense<0.000000e+00> : vector<128xf32>
    %32 = vector.multi_reduction <add>, %17, %cst_23 [0] : vector<16x128xf32> to vector<128xf32>
    %33 = vector.shape_cast %32 : vector<128xf32> to vector<1x128xf32>
    %34 = arith.mulf %17, %17 : vector<16x128xf32>
    %cst_24 = arith.constant dense<0.000000e+00> : vector<128xf32>
    %35 = vector.multi_reduction <add>, %34, %cst_24 [0] : vector<16x128xf32> to vector<128xf32>
    %36 = vector.shape_cast %35 : vector<128xf32> to vector<1x128xf32>
    %37 = tpu.concatenate %33, %36 in 0 : vector<1x128xf32>, vector<1x128xf32> -> vector<2x128xf32>
    %38 = vector.shape_cast %37 : vector<2x128xf32> to vector<1x2x128xf32>
    %c0_25 = arith.constant 0 : index
    %c0_26 = arith.constant 0 : index
    %c0_27 = arith.constant 0 : index
    %39 = vector.load %arg7[%c0_25, %c0_26, %c0_27] : memref<1x2x128xf32, #tpu.memory_space<vmem>>, vector<1x2x128xf32>
    tpu.vector_store %arg7[%c0_25, %c0_26, %c0_27], %38 {strides = array<i32>} : memref<1x2x128xf32, #tpu.memory_space<vmem>>, vector<1x2x128xf32>,
    return
  }
  func.func @transform_0(%arg0: i32) -> (i32, i32, i32) {
    %c0_i32 = arith.constant 0 : i32
    %c0_i32_0 = arith.constant 0 : i32
    %c0_i32_1 = arith.constant 0 : i32
    return %arg0, %c0_i32, %c0_i32_0 : i32, i32, i32
  }
  func.func @transform_1(%arg0: i32) -> (i32, i32) {
    %c0_i32 = arith.constant 0 : i32
    %c0_i32_0 = arith.constant 0 : i32
    %c0_i32_1 = arith.constant 0 : i32
    return %c0_i32, %c0_i32_0 : i32, i32
  }
  func.func @transform_2(%arg0: i32) -> (i32, i32) {
    %c0_i32 = arith.constant 0 : i32
    %c0_i32_0 = arith.constant 0 : i32
    %c0_i32_1 = arith.constant 0 : i32
    return %c0_i32, %c0_i32_0 : i32, i32
  }
  func.func @transform_3(%arg0: i32) -> (i32, i32, i32) {
    %c0_i32 = arith.constant 0 : i32
    %c0_i32_0 = arith.constant 0 : i32
    %c0_i32_1 = arith.constant 0 : i32
    return %arg0, %c0_i32, %c0_i32_0 : i32, i32, i32
  }
  func.func @transform_4(%arg0: i32) -> (i32, i32, i32) {
    %c0_i32 = arith.constant 0 : i32
    %c0_i32_0 = arith.constant 0 : i32
    %c0_i32_1 = arith.constant 0 : i32
    return %arg0, %c0_i32, %c0_i32_0 : i32, i32, i32
  }
  func.func @transform_5(%arg0: i32) -> (i32, i32, i32) {
    %c0_i32 = arith.constant 0 : i32
    %c0_i32_0 = arith.constant 0 : i32
    %c0_i32_1 = arith.constant 0 : i32
    return %arg0, %c0_i32, %c0_i32_0 : i32, i32, i32
  }
  func.func @transform_6(%arg0: i32) -> (i32, i32, i32) {
    %c0_i32 = arith.constant 0 : i32
    %c0_i32_0 = arith.constant 0 : i32
    %c0_i32_1 = arith.constant 0 : i32
    return %arg0, %c0_i32, %c0_i32_0 : i32, i32, i32
  }
}

module attributes {stable_mosaic.version = 11 : i64} {
  func.func @_stage3_kernel(%arg0: i32, %arg1: memref<1x16x128xf32, #tpu.memory_space<vmem>>, %arg2: memref<1x16x128xf32, #tpu.memory_space<vmem>>, %arg3: memref<1x128xf32, #tpu.memory_space<vmem>>, %arg4: memref<1x128xf32, #tpu.memory_space<vmem>>, %arg5: memref<1x128xf32, #tpu.memory_space<vmem>>, %arg6: memref<1x128xf32, #tpu.memory_space<vmem>>, %arg7: memref<1x16x128xf32, #tpu.memory_space<vmem>>) attributes {dimension_semantics = [#tpu.dimension_semantics<parallel>], iteration_bounds = array<i64: 2>, scalar_prefetch = 0 : i64, scratch_operands = 0 : i64, tpu.core_type = #tpu.core_type<tc>, window_params = [{transform_indices = @transform_0, window_bounds = array<i64: 1, 16, 128>}, {transform_indices = @transform_1, window_bounds = array<i64: 1, 16, 128>}, {pipeline_mode = #tpu.pipeline_mode<synchronous>, transform_indices = @transform_2, window_bounds = array<i64: 1, 128>}, {pipeline_mode = #tpu.pipeline_mode<synchronous>, transform_indices = @transform_3, window_bounds = array<i64: 1, 128>}, {pipeline_mode = #tpu.pipeline_mode<synchronous>, transform_indices = @transform_4, window_bounds = array<i64: 1, 128>}, {pipeline_mode = #tpu.pipeline_mode<synchronous>, transform_indices = @transform_5, window_bounds = array<i64: 1, 128>}, {transform_indices = @transform_6, window_bounds = array<i64: 1, 16, 128>}]} {
    %c0 = arith.constant 0 : index
    %c0_0 = arith.constant 0 : index
    %c0_1 = arith.constant 0 : index
    %0 = vector.load %arg1[%c0, %c0_0, %c0_1] : memref<1x16x128xf32, #tpu.memory_space<vmem>>, vector<1x16x128xf32>
    %1 = vector.shape_cast %0 : vector<1x16x128xf32> to vector<16x128xf32>
    %c0_2 = arith.constant 0 : index
    %c0_3 = arith.constant 0 : index
    %2 = vector.load %arg3[%c0_2, %c0_3] : memref<1x128xf32, #tpu.memory_space<vmem>>, vector<1x128xf32>
    %3 = vector.broadcast %2 : vector<1x128xf32> to vector<16x128xf32>
    %4 = arith.mulf %1, %3 : vector<16x128xf32>
    %c0_4 = arith.constant 0 : index
    %c0_5 = arith.constant 0 : index
    %5 = vector.load %arg4[%c0_4, %c0_5] : memref<1x128xf32, #tpu.memory_space<vmem>>, vector<1x128xf32>
    %6 = vector.broadcast %5 : vector<1x128xf32> to vector<16x128xf32>
    %7 = arith.addf %4, %6 : vector<16x128xf32>
    %c0_6 = arith.constant 0 : index
    %c0_7 = arith.constant 0 : index
    %c0_8 = arith.constant 0 : index
    %8 = vector.load %arg2[%c0_6, %c0_7, %c0_8] : memref<1x16x128xf32, #tpu.memory_space<vmem>>, vector<1x16x128xf32>
    %9 = vector.shape_cast %8 : vector<1x16x128xf32> to vector<16x128xf32>
    %c0_9 = arith.constant 0 : index
    %c0_10 = arith.constant 0 : index
    %10 = vector.load %arg5[%c0_9, %c0_10] : memref<1x128xf32, #tpu.memory_space<vmem>>, vector<1x128xf32>
    %11 = vector.broadcast %10 : vector<1x128xf32> to vector<16x128xf32>
    %12 = arith.mulf %9, %11 : vector<16x128xf32>
    %c0_11 = arith.constant 0 : index
    %c0_12 = arith.constant 0 : index
    %13 = vector.load %arg6[%c0_11, %c0_12] : memref<1x128xf32, #tpu.memory_space<vmem>>, vector<1x128xf32>
    %14 = vector.broadcast %13 : vector<1x128xf32> to vector<16x128xf32>
    %15 = arith.addf %12, %14 : vector<16x128xf32>
    %16 = arith.addf %7, %15 : vector<16x128xf32>
    %cst = arith.constant 0.000000e+00 : f32
    %17 = vector.broadcast %cst : f32 to vector<16x128xf32>
    %18 = arith.maximumf %16, %17 : vector<16x128xf32>
    %c0_13 = arith.constant 0 : index
    %c0_14 = arith.constant 0 : index
    %c0_15 = arith.constant 0 : index
    %19 = vector.load %arg7[%c0_13, %c0_14, %c0_15] : memref<1x16x128xf32, #tpu.memory_space<vmem>>, vector<1x16x128xf32>
    %20 = vector.shape_cast %19 : vector<1x16x128xf32> to vector<16x128xf32>
    %21 = vector.shape_cast %18 : vector<16x128xf32> to vector<1x16x128xf32>
    tpu.vector_store %arg7[%c0_13, %c0_14, %c0_15], %21 {strides = array<i32>} : memref<1x16x128xf32, #tpu.memory_space<vmem>>, vector<1x16x128xf32>,
    return
  }
  func.func @transform_0(%arg0: i32) -> (i32, i32, i32) {
    %c0_i32 = arith.constant 0 : i32
    %c0_i32_0 = arith.constant 0 : i32
    %c0_i32_1 = arith.constant 0 : i32
    return %arg0, %c0_i32, %c0_i32_0 : i32, i32, i32
  }
  func.func @transform_1(%arg0: i32) -> (i32, i32, i32) {
    %c0_i32 = arith.constant 0 : i32
    %c0_i32_0 = arith.constant 0 : i32
    %c0_i32_1 = arith.constant 0 : i32
    return %arg0, %c0_i32, %c0_i32_0 : i32, i32, i32
  }
  func.func @transform_2(%arg0: i32) -> (i32, i32) {
    %c0_i32 = arith.constant 0 : i32
    %c0_i32_0 = arith.constant 0 : i32
    %c0_i32_1 = arith.constant 0 : i32
    return %c0_i32, %c0_i32_0 : i32, i32
  }
  func.func @transform_3(%arg0: i32) -> (i32, i32) {
    %c0_i32 = arith.constant 0 : i32
    %c0_i32_0 = arith.constant 0 : i32
    %c0_i32_1 = arith.constant 0 : i32
    return %c0_i32, %c0_i32_0 : i32, i32
  }
  func.func @transform_4(%arg0: i32) -> (i32, i32) {
    %c0_i32 = arith.constant 0 : i32
    %c0_i32_0 = arith.constant 0 : i32
    %c0_i32_1 = arith.constant 0 : i32
    return %c0_i32, %c0_i32_0 : i32, i32
  }
  func.func @transform_5(%arg0: i32) -> (i32, i32) {
    %c0_i32 = arith.constant 0 : i32
    %c0_i32_0 = arith.constant 0 : i32
    %c0_i32_1 = arith.constant 0 : i32
    return %c0_i32, %c0_i32_0 : i32, i32
  }
  func.func @transform_6(%arg0: i32) -> (i32, i32, i32) {
    %c0_i32 = arith.constant 0 : i32
    %c0_i32_0 = arith.constant 0 : i32
    %c0_i32_1 = arith.constant 0 : i32
    return %arg0, %c0_i32, %c0_i32_0 : i32, i32, i32
  }
}

module attributes {stable_mosaic.version = 11 : i64} {
  func.func @_stage2_kernel(%arg0: i32, %arg1: memref<1x16x128xf32, #tpu.memory_space<vmem>>, %arg2: memref<1x128xf32, #tpu.memory_space<vmem>>, %arg3: memref<1x128xf32, #tpu.memory_space<vmem>>, %arg4: memref<384x128xbf16, #tpu.memory_space<vmem>>, %arg5: memref<1x16x128xf32, #tpu.memory_space<vmem>>, %arg6: memref<1x2x128xf32, #tpu.memory_space<vmem>>) attributes {dimension_semantics = [#tpu.dimension_semantics<parallel>], iteration_bounds = array<i64: 2>, scalar_prefetch = 0 : i64, scratch_operands = 0 : i64, tpu.core_type = #tpu.core_type<tc>, window_params = [{transform_indices = @transform_0, window_bounds = array<i64: 1, 16, 128>}, {pipeline_mode = #tpu.pipeline_mode<synchronous>, transform_indices = @transform_1, window_bounds = array<i64: 1, 128>}, {pipeline_mode = #tpu.pipeline_mode<synchronous>, transform_indices = @transform_2, window_bounds = array<i64: 1, 128>}, {pipeline_mode = #tpu.pipeline_mode<synchronous>, transform_indices = @transform_3, window_bounds = array<i64: 384, 128>}, {transform_indices = @transform_4, window_bounds = array<i64: 1, 16, 128>}, {transform_indices = @transform_5, window_bounds = array<i64: 1, 2, 128>}]} {
    %c0 = arith.constant 0 : index
    %c0_0 = arith.constant 0 : index
    %c0_1 = arith.constant 0 : index
    %0 = vector.load %arg1[%c0, %c0_0, %c0_1] : memref<1x16x128xf32, #tpu.memory_space<vmem>>, vector<1x16x128xf32>
    %1 = vector.shape_cast %0 : vector<1x16x128xf32> to vector<16x128xf32>
    %c0_2 = arith.constant 0 : index
    %c0_3 = arith.constant 0 : index
    %2 = vector.load %arg2[%c0_2, %c0_3] : memref<1x128xf32, #tpu.memory_space<vmem>>, vector<1x128xf32>
    %3 = vector.broadcast %2 : vector<1x128xf32> to vector<16x128xf32>
    %4 = arith.mulf %1, %3 : vector<16x128xf32>
    %c0_4 = arith.constant 0 : index
    %c0_5 = arith.constant 0 : index
    %5 = vector.load %arg3[%c0_4, %c0_5] : memref<1x128xf32, #tpu.memory_space<vmem>>, vector<1x128xf32>
    %6 = vector.broadcast %5 : vector<1x128xf32> to vector<16x128xf32>
    %7 = arith.addf %4, %6 : vector<16x128xf32>
    %cst = arith.constant 0.000000e+00 : f32
    %8 = vector.broadcast %cst : f32 to vector<16x128xf32>
    %9 = arith.maximumf %7, %8 : vector<16x128xf32>
    %10 = arith.truncf %9 : vector<16x128xf32> to vector<16x128xbf16>
    %cst_6 = arith.constant 0.000000e+00 : bf16
    %11 = vector.broadcast %cst_6 : bf16 to vector<1x128xbf16>
    %12 = vector.extract_strided_slice %10 {offsets = [0, 0], sizes = [15, 128], strides = [1, 1]} : vector<16x128xbf16> to vector<15x128xbf16>
    %13 = tpu.concatenate %11, %12 in 0 : vector<1x128xbf16>, vector<15x128xbf16> -> vector<16x128xbf16>
    %14 = vector.extract_strided_slice %10 {offsets = [1, 0], sizes = [15, 128], strides = [1, 1]} : vector<16x128xbf16> to vector<15x128xbf16>
    %15 = tpu.concatenate %14, %11 in 0 : vector<15x128xbf16>, vector<1x128xbf16> -> vector<16x128xbf16>
    %c0_7 = arith.constant 0 : index
    %c0_8 = arith.constant 0 : index
    %16 = vector.load %arg4[%c0_7, %c0_8] : memref<384x128xbf16, #tpu.memory_space<vmem>>, vector<128x128xbf16>
    %cst_9 = arith.constant dense<0.000000e+00> : vector<16x128xf32>
    %17 = tpu.matmul %13, %16, %cst_9 {dimension_numbers = #tpu.dot_dimension_numbers<[1], [0], [0], [1], [0, 0, 1, 1], [], []>} : vector<16x128xbf16>, vector<128x128xbf16>, vector<16x128xf32> -> vector<16x128xf32>
    %c128 = arith.constant 128 : index
    %c0_10 = arith.constant 0 : index
    %18 = vector.load %arg4[%c128, %c0_10] : memref<384x128xbf16, #tpu.memory_space<vmem>>, vector<128x128xbf16>
    %cst_11 = arith.constant dense<0.000000e+00> : vector<16x128xf32>
    %19 = tpu.matmul %10, %18, %cst_11 {dimension_numbers = #tpu.dot_dimension_numbers<[1], [0], [0], [1], [0, 0, 1, 1], [], []>} : vector<16x128xbf16>, vector<128x128xbf16>, vector<16x128xf32> -> vector<16x128xf32>
    %20 = arith.addf %17, %19 : vector<16x128xf32>
    %c256 = arith.constant 256 : index
    %c0_12 = arith.constant 0 : index
    %21 = vector.load %arg4[%c256, %c0_12] : memref<384x128xbf16, #tpu.memory_space<vmem>>, vector<128x128xbf16>
    %cst_13 = arith.constant dense<0.000000e+00> : vector<16x128xf32>
    %22 = tpu.matmul %15, %21, %cst_13 {dimension_numbers = #tpu.dot_dimension_numbers<[1], [0], [0], [1], [0, 0, 1, 1], [], []>} : vector<16x128xbf16>, vector<128x128xbf16>, vector<16x128xf32> -> vector<16x128xf32>
    %23 = arith.addf %20, %22 : vector<16x128xf32>
    %c0_14 = arith.constant 0 : index
    %c0_15 = arith.constant 0 : index
    %c0_16 = arith.constant 0 : index
    %24 = vector.load %arg5[%c0_14, %c0_15, %c0_16] : memref<1x16x128xf32, #tpu.memory_space<vmem>>, vector<1x16x128xf32>
    %25 = vector.shape_cast %24 : vector<1x16x128xf32> to vector<16x128xf32>
    %26 = vector.shape_cast %23 : vector<16x128xf32> to vector<1x16x128xf32>
    tpu.vector_store %arg5[%c0_14, %c0_15, %c0_16], %26 {strides = array<i32>} : memref<1x16x128xf32, #tpu.memory_space<vmem>>, vector<1x16x128xf32>,
    %cst_17 = arith.constant dense<0.000000e+00> : vector<128xf32>
    %27 = vector.multi_reduction <add>, %23, %cst_17 [0] : vector<16x128xf32> to vector<128xf32>
    %28 = vector.shape_cast %27 : vector<128xf32> to vector<1x128xf32>
    %29 = arith.mulf %23, %23 : vector<16x128xf32>
    %cst_18 = arith.constant dense<0.000000e+00> : vector<128xf32>
    %30 = vector.multi_reduction <add>, %29, %cst_18 [0] : vector<16x128xf32> to vector<128xf32>
    %31 = vector.shape_cast %30 : vector<128xf32> to vector<1x128xf32>
    %32 = tpu.concatenate %28, %31 in 0 : vector<1x128xf32>, vector<1x128xf32> -> vector<2x128xf32>
    %33 = vector.shape_cast %32 : vector<2x128xf32> to vector<1x2x128xf32>
    %c0_19 = arith.constant 0 : index
    %c0_20 = arith.constant 0 : index
    %c0_21 = arith.constant 0 : index
    %34 = vector.load %arg6[%c0_19, %c0_20, %c0_21] : memref<1x2x128xf32, #tpu.memory_space<vmem>>, vector<1x2x128xf32>
    tpu.vector_store %arg6[%c0_19, %c0_20, %c0_21], %33 {strides = array<i32>} : memref<1x2x128xf32, #tpu.memory_space<vmem>>, vector<1x2x128xf32>,
    return
  }
  func.func @transform_0(%arg0: i32) -> (i32, i32, i32) {
    %c0_i32 = arith.constant 0 : i32
    %c0_i32_0 = arith.constant 0 : i32
    %c0_i32_1 = arith.constant 0 : i32
    return %arg0, %c0_i32, %c0_i32_0 : i32, i32, i32
  }
  func.func @transform_1(%arg0: i32) -> (i32, i32) {
    %c0_i32 = arith.constant 0 : i32
    %c0_i32_0 = arith.constant 0 : i32
    %c0_i32_1 = arith.constant 0 : i32
    return %c0_i32, %c0_i32_0 : i32, i32
  }
  func.func @transform_2(%arg0: i32) -> (i32, i32) {
    %c0_i32 = arith.constant 0 : i32
    %c0_i32_0 = arith.constant 0 : i32
    %c0_i32_1 = arith.constant 0 : i32
    return %c0_i32, %c0_i32_0 : i32, i32
  }
  func.func @transform_3(%arg0: i32) -> (i32, i32) {
    %c0_i32 = arith.constant 0 : i32
    %c0_i32_0 = arith.constant 0 : i32
    %c0_i32_1 = arith.constant 0 : i32
    return %c0_i32, %c0_i32_0 : i32, i32
  }
  func.func @transform_4(%arg0: i32) -> (i32, i32, i32) {
    %c0_i32 = arith.constant 0 : i32
    %c0_i32_0 = arith.constant 0 : i32
    %c0_i32_1 = arith.constant 0 : i32
    return %arg0, %c0_i32, %c0_i32_0 : i32, i32, i32
  }
  func.func @transform_5(%arg0: i32) -> (i32, i32, i32) {
    %c0_i32 = arith.constant 0 : i32
    %c0_i32_0 = arith.constant 0 : i32
    %c0_i32_1 = arith.constant 0 : i32
    return %arg0, %c0_i32, %c0_i32_0 : i32, i32, i32
  }
}

</mosaic_0001>

<bundles_post_ra>
// kernel: tile.58
= control target key start
LH: loop header
LB: loop body
LE: loop exit
PB: predicated region body
PF: predicated region fallthrough
CT: control target
= control target key end

     0   :  { %s28_s0 = inlined_call_operand.vmem [shape: f32[8], index: 0, kind: input, shape index: {}]   ;;  %s29_s1 = inlined_call_operand.vmem [shape: f32[16,8], index: 1, kind: output, shape index: {}]  }
   0x1   :  { %v4_v0 = vld [vmem:[%s28_s0] ss:$0 sm:$0xff] }
   0x2   :  { %5 = vst [vmem:[%s29_s1] sm:$0xff] %v4_v0 }
   0x3   :  { %8 = vst [vmem:[%s29_s1 + $0x8] sm:$0xff] %v4_v0 }

// kernel: tile.59
= control target key start
LH: loop header
LB: loop body
LE: loop exit
PB: predicated region body
PF: predicated region fallthrough
CT: control target
= control target key end

     0   :  { %s131_s10 = smov 120   ;;  %s132_s11 = smov 104   ;;  %vm3_vm0 = vcmask 64512   ;;  %vm9_vm1 = vcmask 1048512   ;;  %vm15_vm2 = vcmask 982912   ;;  %vm21_vm3 = vcmask 917312   ;;  %s207_s0 = inlined_call_operand.vmem [shape: f32[16,8], index: 0, kind: input, shape index: {}]   ;;  %s208_s1 = inlined_call_operand.vmem [shape: f32[1,128], index: 1, kind: output, shape index: {}]  }
   0x1   :  { %v101_v0 = vld [vmem:[%s207_s0 + $0xf] sm:$0x1]   ;;  %v103_v1 = vld [vmem:[%s207_s0 + $0xd] sm:$0x1]   ;;  %v105_v2 = vld [vmem:[%s207_s0 + $0xb] sm:$0x1]  }
   0x2   :  { %7 = vrot.lane.b32.xlu0 %v101_v0, %s131_s10  ;;  %19 = vrot.lane.b32.xlu1 %v103_v1, %s132_s11  ;;  %s133_s14 = smov 88   ;;  %v102_v3 = vld [vmem:[%s207_s0 + $0xe] sm:$0x1]   ;;  %v104_v4 = vld [vmem:[%s207_s0 + $0xc] sm:$0x1]   ;;  %s134_s19 = smov 112  }
   0x3   :  { %31 = vrot.lane.b32.xlu2 %v105_v2, %s133_s14  ;;  %s135_s20 = smov 96   ;;  %v106_v5 = vld [vmem:[%s207_s0 + $0xa] sm:$0x1]   ;;  %s136_s23 = smov 80   ;;  %v107_v6 = vld [vmem:[%s207_s0 + $0x9] sm:$0x1]  }
   0x4   :  { %v108_v7 = vld [vmem:[%s207_s0 + $0x8] sm:$0x1]   ;;  %s137_s28 = smov 72   ;;  %s138_s29 = smov 64   ;;  %v109_v8 = vld [vmem:[%s207_s0 + $0x7] sm:$0x1]  }
   0x5   :  { %s139_s3 = smov 56   ;;  %v110_v9 = vld [vmem:[%s207_s0 + $0x6] sm:$0x1]   ;;  %v111_v10 = vld [vmem:[%s207_s0 + $0x5] sm:$0x1]   ;;  %s140_s8 = smov 48  }
   0x6   :  { %s141_s9 = smov 40   ;;  %v112_v11 = vld [vmem:[%s207_s0 + $0x4] sm:$0x1]   ;;  %s142_s12 = smov 32   ;;  %v113_v12 = vld [vmem:[%s207_s0 + $0x3] sm:$0x1]  }
   0x7   :  { %v114_v13 = vld [vmem:[%s207_s0 + $0x2] sm:$0x1]   ;;  %s143_s17 = smov 24   ;;  %s144_s18 = smov 16   ;;  %v115_v14 = vld [vmem:[%s207_s0 + $0x1] sm:$0x1]  }
   0x8   :  { %s145_s21 = smov 8   ;;  %v2_v15 = vld [vmem:[%s207_s0] sm:$0x1]   ;;  %vm27_vm4 = vcmask 851712   ;;  %vm33_vm5 = vcmask 786112   ;;  %vm39_vm6 = vcmask 720512  }
   0x9   :  { %4 = vst.msk [vmem:[#allocation0] sm:$0x1] %vm3_vm0, %v2_v15   ;;  %vm45_vm7 = vcmask 654912   ;;  %vm51_vm8 = vcmask 589312   ;;  %vm57_vm9 = vcmask 523712   ;;  %vm63_vm10 = vcmask 458112  }
   0xa   :  { %13 = vrot.lane.b32.xlu0 %v102_v3, %s134_s19  ;;  %25 = vrot.lane.b32.xlu1 %v104_v4, %s135_s20  ;;  %vm69_vm11 = vcmask 392512   ;;  %vm75_vm12 = vcmask 326912   ;;  %vm81_vm13 = vcmask 261312   ;;  %vm87_vm14 = vcmask 195712  }
   0xb   :  { %37 = vrot.lane.b32.xlu2 %v106_v5, %s136_s23  ;;  %vm93_vm15 = vcmask 130112  }
  0x12   :  { %43 = vrot.lane.b32.xlu0 %v107_v6, %s137_s28  ;;  %49 = vrot.lane.b32.xlu1 %v108_v7, %s138_s29 }
  0x13   :  { %55 = vrot.lane.b32.xlu2 %v109_v8, %s139_s3 }
  0x1a   :  { %61 = vrot.lane.b32.xlu0 %v110_v9, %s140_s8  ;;  %67 = vrot.lane.b32.xlu1 %v111_v10, %s141_s9 }
  0x1b   :  { %73 = vrot.lane.b32.xlu2 %v112_v11, %s142_s12 }
  0x22   :  { %79 = vrot.lane.b32.xlu0 %v113_v12, %s143_s17  ;;  %85 = vrot.lane.b32.xlu1 %v114_v13, %s144_s18 }
  0x23   :  { %91 = vrot.lane.b32.xlu2 %v115_v14, %s145_s21 }
  0x5d   :  { %v32_v16 = vpop.permute.xlu2 %31  }
  0x65   :  { %v38_v17 = vpop.permute.xlu2 %37  }
  0x6d   :  { %v56_v18 = vpop.permute.xlu2 %55  }
  0x74   :  { %v8_v19 = vpop.permute.xlu0 %7   ;;  %v20_v20 = vpop.permute.xlu1 %19  }
  0x75   :  { %10 = vst.msk [vmem:[#allocation0] sm:$0x1] %vm9_vm1, %v8_v19   ;;  %v74_v21 = vpop.permute.xlu2 %73  }
  0x7c   :  { %v14_v22 = vpop.permute.xlu0 %13   ;;  %v26_v23 = vpop.permute.xlu1 %25  }
  0x7d   :  { %16 = vst.msk [vmem:[#allocation0] sm:$0x1] %vm15_vm2, %v14_v22   ;;  %v92_v24 = vpop.permute.xlu2 %91  }
  0x7e   :  { %22 = vst.msk [vmem:[#allocation0] sm:$0x1] %vm21_vm3, %v20_v20  }
  0x7f   :  { %28 = vst.msk [vmem:[#allocation0] sm:$0x1] %vm27_vm4, %v26_v23  }
  0x80   :  { %34 = vst.msk [vmem:[#allocation0] sm:$0x1] %vm33_vm5, %v32_v16  }
  0x81   :  { %40 = vst.msk [vmem:[#allocation0] sm:$0x1] %vm39_vm6, %v38_v17  }
  0x84   :  { %v44_v25 = vpop.permute.xlu0 %43   ;;  %v50_v26 = vpop.permute.xlu1 %49  }
  0x85   :  { %46 = vst.msk [vmem:[#allocation0] sm:$0x1] %vm45_vm7, %v44_v25  }
  0x86   :  { %52 = vst.msk [vmem:[#allocation0] sm:$0x1] %vm51_vm8, %v50_v26  }
  0x87   :  { %58 = vst.msk [vmem:[#allocation0] sm:$0x1] %vm57_vm9, %v56_v18  }
  0x8c   :  { %v62_v27 = vpop.permute.xlu0 %61   ;;  %v68_v28 = vpop.permute.xlu1 %67  }
  0x8d   :  { %64 = vst.msk [vmem:[#allocation0] sm:$0x1] %vm63_vm10, %v62_v27  }
  0x8e   :  { %70 = vst.msk [vmem:[#allocation0] sm:$0x1] %vm69_vm11, %v68_v28  }
  0x8f   :  { %76 = vst.msk [vmem:[#allocation0] sm:$0x1] %vm75_vm12, %v74_v21  }
  0x94   :  { %v80_v29 = vpop.permute.xlu0 %79   ;;  %v86_v30 = vpop.permute.xlu1 %85  }
  0x95   :  { %82 = vst.msk [vmem:[#allocation0] sm:$0x1] %vm81_vm13, %v80_v29  }
  0x96   :  { %88 = vst.msk [vmem:[#allocation0] sm:$0x1] %vm87_vm14, %v86_v30  }
  0x97   :  { %94 = vst.msk [vmem:[#allocation0] sm:$0x1] %vm93_vm15, %v92_v24  }
  0x9e   :  { %v97_v31 = vld [vmem:[#allocation0] sm:$0x1] }
  0x9f   :  { %100 = vst [vmem:[%s208_s1] sm:$0x1] %v97_v31 }

// kernel: resblock_forward_lane.5
= control target key start
LH: loop header
LB: loop body
LE: loop exit
PB: predicated region body
PF: predicated region fallthrough
CT: control target
= control target key end

     0   :  { %11 = vsyncpa [#allocation3], 0  ;;  %s661_s0 = inlined_call_operand.vmem [shape: f32[2,16,128], index: 0, kind: input, shape index: {}]   ;;  %s662_s1 = inlined_call_operand.vmem [shape: f32[2,16,128], index: 1, kind: input, shape index: {}]   ;;  %s663_s2 = inlined_call_operand.vmem [shape: f32[1,128], index: 2, kind: input, shape index: {}]   ;;  %s664_s3 = inlined_call_operand.vmem [shape: f32[1,128], index: 3, kind: input, shape index: {}]   ;;  %s665_s4 = inlined_call_operand.vmem [shape: f32[1,128], index: 4, kind: input, shape index: {}]   ;;  %s666_s5 = inlined_call_operand.vmem [shape: f32[1,128], index: 5, kind: input, shape index: {}]   ;;  %s667_s6 = inlined_call_operand.hbm [shape: f32[2,16,128], index: 6, kind: output, shape index: {}]  }
   0x1   :  { %13 = vsyncpa [#allocation3 + $0x1], 0  ;;  %s557_s21 = smov 0   ;;  %s559_s22 = smov 0  }
   0x2   :  { %s561_s23 = smov 0   ;;  %s563_s24 = smov 0  }
   0x3 LB: > { %s578_s25 = sadd.s32 4294967295, %s518_s24   ;;  %s394_s26 = sadd.s32 4294967294, %s518_s24   ;;  %s518_s24 = sphi %s563_s24, %s677_s24   ;;  %s514_s23 = sphi %s561_s23, %s676_s23   ;;  %s510_s22 = sphi %s559_s22, %s675_s22   ;;  %s506_s21 = sphi %s557_s21, %s674_s21  }
   0x4   : > { %s582_s27 = sadd.s32 1, %s518_s24   ;;  %s162_s28 = sadd.s32 1, %s514_s23 }
   0x5   : > { %s159_s29 = ssub.s32 %s518_s24, %s582_s27  ;;  %p172_p0 = scmp.ne.s32.totalorder %s514_s23, %s510_s22 }
   0x6   : > { %p160_p1 = scmp.eq.s32.totalorder %s159_s29, 0  ;;  %p173_p2 = scmp.eq.s32.totalorder %s578_s25, 1 }
   0x7   : > { %p178_p3 = scmp.ne.s32.totalorder %s510_s22, %s506_s21  ;;  %p179_p4 = scmp.eq.s32.totalorder %s394_s26, 1 }
   0x8   : > { %s593_s30 = scalar_select %p160_p1, %s514_s23, %s162_s28  }
   0x9   : > { %p595_p5 = por %p173_p2, %p172_p0  ;;  %p599_p6 = por %p179_p4, %p178_p3 }
   0xa   : > { %669 = sst [smem:[#allocation5_spill]] %s593_s30  ;;  %p397_p7 = scmp.ge.s32.totalorder %s518_s24, 1 }
   0xb   : > { %p225_p8 = scmp.lt.s32.totalorder %s518_s24, 3 }
   0xd   : > { %p226_p9 = pnand %p397_p7, %p225_p8 }
   0xe   : > { %p260_p10 = scmp.lt.s32.totalorder (!%p226_p9), %s578_s25, 1  ;;  %s668_s9 = sand.u32 (!%p226_p9), 1, %s510_s22  }
   0xf   : > { %229 = sbr.rel (%p226_p9) target bundleno = 39 (0x27), region = 44  ;;  %s398_s11 = sshll.u32 (!%p226_p9), %s668_s9, 4 }
  0x10   : > { %s410_s17 = sshll.u32 (!%p226_p9), %s578_s25, 4  ;;  %s259_s30 = scalar_lea.vmem (!%p226_p9), [#allocation2], %s398_s11 }
  0x11   : > { %s316_s14 = scalar_lea.hbm (!%p226_p9), %s667_s6, %s410_s17  ;;  %s317_s9 = sshll.u32 (!%p226_p9), %s259_s30, 4  ;;  %s318_s9 = int_to_ptr.vmem [resolvable:$true] %s317_s9 }
  0x12   : > { %s319_s15 = sshll.u32 (!%p226_p9), %s316_s14, 4  ;;  %s476_s26 = scalar_lea.hbm (!%p226_p9), %s667_s6, 32  ;;  %s320_s15 = int_to_ptr.hbm [resolvable:$true] %s319_s15 }
  0x13   : > { %s470_s17 = sshra.s32 (!%p226_p9), %s320_s15, 4  ;;  %s471_s17 = int_to_ptr.hbm [resolvable:$true] %s470_s17 }
  0x14   : > { %s261_s10 = scalar_select %p260_p10, %s578_s25, 1  ;;  %v452_v0 = vld [vmem:[%s663_s2] ss:$0 sm:$0xff] }
  0x15   : > { %v454_v1 = vld [vmem:[%s665_s4] ss:$0 sm:$0xff]  ;;  %s472_s19 = scalar_lea.hbm %s471_s17, 16  ;;  %p477_p0 = scmp.lt.s32.totalorder %s471_s17, %s667_s6 }
  0x16   : > { %s408_s16 = sshll.u32 %s261_s10, 4  ;;  %v453_v2 = vld [vmem:[%s664_s3] ss:$0 sm:$0xff]  ;;  %p473_p11 = scmp.ne.s32.totalorder %s471_s17, %s472_s19 }
  0x17   : > { %s264_s20 = scalar_lea.vmem %s661_s0, %s408_s16  ;;  %s269_s29 = scalar_lea.vmem %s662_s1, %s408_s16  ;;  %v455_v3 = vld [vmem:[%s666_s5] ss:$0 sm:$0xff] }
  0x18   : > { %v270_v4 = vld [vmem:[%s264_s20] sm:$0xff]  ;;  %v271_v6 = vld [vmem:[%s264_s20 + $0x8] sm:$0xff]  ;;  %s672_s16 = sand.u32 1, %s510_s22   ;;  %p474_p12 = pnand %p473_p11, %p595_p5 }
  0x19   : > { %v284_v5 = vld [vmem:[%s269_s29] sm:$0xff]  ;;  %v276_v7 = vmul.f32 %v452_v0, %v270_v4  ;;  %v277_v9 = vmul.f32 %v452_v0, %v271_v6  ;;  %v285_v10 = vld [vmem:[%s269_s29 + $0x8] sm:$0xff]  ;;  %s305_s18 = scalar_lea.sflag [#allocation3], %s672_s16  ;;  %p478_p1 = scmp.lt.s32.totalorder %s476_s26, %s472_s19 }
  0x1a   : > { %v290_v8 = vmul.f32 %v454_v1, %v284_v5  ;;  %v291_v11 = vmul.f32 %v454_v1, %v285_v10  ;;  %p475_p13 = pneg %p474_p12 }
  0x1b   : > { %v282_v12 = vadd.f32 %v453_v2, %v276_v7  ;;  %v283_v14 = vadd.f32 %v453_v2, %v277_v9  ;;  %p479_p2 = por %p478_p1, %p477_p0 }
  0x1c   : > { %v296_v13 = vadd.f32 %v455_v3, %v290_v8  ;;  %v297_v15 = vadd.f32 %v455_v3, %v291_v11 }
  0x1d   : > { %p480_p3 = pnand %p479_p2, %p475_p13 }
  0x1e   : > { %v298_v16 = vadd.f32 %v296_v13, %v282_v12  ;;  %v299_v17 = vadd.f32 %v297_v15, %v283_v14 }
  0x20   : > { %v300_v18 = vmax.f32 %v298_v16, 0.0  ;;  %v301_v19 = vmax.f32 %v299_v17, 0.0 }
  0x22   : > { %302 = vst [vmem:[%s259_s30] sm:$0xff] %v300_v18 }
  0x23   : > { %303 = vst [vmem:[%s259_s30 + $0x8] sm:$0xff] %v301_v19 }
  0x24   : > { %483 = shalt.err (!%p480_p3)
}
  0x25   : > { %s520_s12 = smov 128   ;;  %s521_s13 = smov 8  }
  0x26   : > { %411 = dma.vmem_to_hbm [thread:$0]  (%p595_p5), %s318_s9, 256, %s320_s15, %s305_s18, %s520_s12, %s520_s12, %s521_s13  }
  0x27 PF: > { %p417_p4 = scmp.ge.s32.totalorder %s518_s24, 2  ;;  %s334_s25 = sand.u32 1, %s506_s21  }
  0x28   : > { %s335_s10 = scalar_lea.sflag [#allocation3], %s334_s25 }
  0x29   : > { %p414_p7 = pnand %p417_p4, %p599_p6 }
  0x2b   : > { %p415_p8 = pneg %p414_p7 }
  0x2d   : > { %501 = dma.done.wait (%p415_p8), %s335_s10, 256  }
  0x2e   : > { %503 = vsyncadd (%p415_p8), %s335_s10, 4294967040  ;;  %s673_s14 = sld [smem:[#allocation5_spill]]  ;;  %p16_p9 = scmp.ge.s32.totalorder %s582_s27, 4  }
  0x2f   : > { %s674_s21 = smov %s510_s22  ;;  %s675_s22 = smov %s514_s23 }
  0x30   : > { %s677_s24 = smov %s582_s27  ;;  %18 = sbr.rel (!%p16_p9) target bundleno = 3 (0x3), region = 82 }
  0x34   : > { %s676_s23 = smov %s673_s14 }
  0x35   :  { %341 = vsyncpa [#allocation3], 1 }
  0x36   :  { %343 = vsyncpa [#allocation3 + $0x1], 1 }

// kernel: resblock_forward_lane.3
= control target key start
LH: loop header
LB: loop body
LE: loop exit
PB: predicated region body
PF: predicated region fallthrough
CT: control target
= control target key end

     0   :  { %12 = vsyncpa [#allocation3], 0  ;;  %s1250_s0 = inlined_call_operand.hbm [shape: f32[2,16,64], index: 0, kind: input, shape index: {}]   ;;  %s1251_s1 = inlined_call_operand.hbm [shape: bf16[192,128], index: 1, kind: input, shape index: {}]   ;;  %s1252_s2 = inlined_call_operand.hbm [shape: bf16[64,128], index: 2, kind: input, shape index: {}]   ;;  %s1253_s3 = inlined_call_operand.vmem [shape: f32[2,16,128], index: 3, kind: output, shape index: {0}]   ;;  %s1254_s4 = inlined_call_operand.vmem [shape: f32[2,16,128], index: 4, kind: output, shape index: {1}]   ;;  %s1255_s5 = inlined_call_operand.vmem [shape: f32[2,2,128], index: 5, kind: output, shape index: {2}]   ;;  %s1256_s6 = inlined_call_operand.vmem [shape: f32[2,2,128], index: 6, kind: output, shape index: {3}]  }
   0x1   :  { %14 = vsyncpa [#allocation3 + $0x1], 0 }
   0x2   :  { %15 = vsyncpa [#allocation5], 0  ;;  %s1128_s21 = smov 0   ;;  %s1130_s22 = smov 0  }
   0x3   :  { %s1132_s23 = smov 0   ;;  %s1134_s24 = smov 0  }
   0x4 LB: > { %s1147_s25 = sadd.s32 4294967295, %s1085_s24   ;;  %p41_p0 = scmp.ne.s32.totalorder %s1077_s22, %s1073_s21  ;;  %s1085_s24 = sphi %s1134_s24, %s1263_s24   ;;  %s1081_s23 = sphi %s1132_s23, %s1262_s23   ;;  %s1077_s22 = sphi %s1130_s22, %s1261_s22   ;;  %s1073_s21 = sphi %s1128_s21, %s1260_s21  }
   0x5   : > { %p42_p1 = scmp.eq.s32.totalorder %s1147_s25, 0  ;;  %p787_p2 = scmp.ge.s32.totalorder %s1085_s24, 1 }
   0x6   : > { %p198_p3 = scmp.lt.s32.totalorder %s1085_s24, 3  ;;  %s209_s29 = sshll.u32 %s1251_s1, 4  ;;  %s210_s29 = int_to_ptr.hbm [resolvable:$true] %s209_s29 }
   0x7   : > { %p1155_p4 = por %p42_p1, %p41_p0  ;;  %s1087_s7 = smov [#allocation4]  }
   0x8   : > { %p1162_p5 = pnand %p787_p2, %p198_p3  ;;  %s211_s8 = sshll.u32 %s1087_s7, 4  ;;  %s212_s8 = int_to_ptr.vmem [resolvable:$true] %s211_s8 }
   0x9   : > { %s223_s11 = sshll.u32 %s1252_s2, 4  ;;  %s1088_s12 = smov 64   ;;  %s224_s11 = int_to_ptr.hbm [resolvable:$true] %s223_s11 }
   0xa   : > { %p903_p6 = pneg %p1162_p5  ;;  %s1089_s13 = smov 4  }
   0xb   : > { %s1090_s14 = smov [#allocation6]   ;;  %s1174_s16 = sadd.s32 1, %s1085_s24  }
   0xc   : > { %p904_p7 = pnand %p903_p6, %p42_p1  ;;  %s225_s15 = sshll.u32 %s1090_s14, 4  ;;  %s226_s15 = int_to_ptr.vmem [resolvable:$true] %s225_s15 }
   0xd   : > { %s28_s17 = sadd.s32 1, %s1081_s23  ;;  %s25_s18 = ssub.s32 %s1085_s24, %s1174_s16 }
   0xe   : > { %906 = dma.hbm_to_vmem [thread:$0]  (!%p904_p7), %s210_s29, 1536, %s212_s8, [#allocation5], %s1088_s12, %s1088_s12, %s1089_s13  }
   0xf   : > { %909 = dma.hbm_to_vmem [thread:$0]  (!%p904_p7), %s224_s11, 512, %s226_s15, [#allocation5], %s1088_s12, %s1088_s12, %s1089_s13  }
  0x10   : > { %p35_p8 = scmp.ne.s32.totalorder %s1081_s23, %s1077_s22  ;;  %p26_p9 = scmp.eq.s32.totalorder %s25_s18, 0 }
  0x11   : > { %p36_p10 = scmp.eq.s32.totalorder %s1085_s24, 0  ;;  %p916_p11 = scmp.lt.s32.totalorder %s1085_s24, 2 }
  0x12   : > { %s239_s19 = sand.u32 1, %s1081_s23   ;;  %s874_s27 = sshll.u32 %s1085_s24, 4 }
  0x13   : > { %s1185_s20 = scalar_select %p26_p9, %s1081_s23, %s28_s17  }
  0x14   : > { %p37_p12 = por %p36_p10, %p35_p8  ;;  %s791_s21 = sshll.u32 %s239_s19, 4 }
  0x15   : > { %s248_s7 = scalar_lea.hbm %s1250_s0, %s874_s27  ;;  %s243_s9 = scalar_lea.vmem [#allocation2], %s791_s21 }
  0x16   : > { %s249_s8 = sshll.u32 %s248_s7, 4  ;;  %s251_s10 = sshll.u32 %s243_s9, 4  ;;  %s250_s8 = int_to_ptr.hbm [resolvable:$true] %s249_s8  ;;  %s252_s10 = int_to_ptr.vmem [resolvable:$true] %s251_s10 }
  0x17   : > { %p1191_p13 = pnand %p916_p11, %p37_p12  ;;  %s240_s12 = scalar_lea.sflag [#allocation3], %s239_s19 }
  0x18   : > { %s1017_s13 = sshra.s32 %s250_s8, 4  ;;  %s1024_s17 = scalar_lea.hbm %s1250_s0, 32  ;;  %s1018_s13 = int_to_ptr.hbm [resolvable:$true] %s1017_s13 }
  0x19   : > { %s1019_s14 = scalar_lea.hbm %s1018_s13, 16  ;;  %p1021_p2 = pneg %p1191_p13 }
  0x1a   : > { %p1020_p0 = scmp.ne.s32.totalorder %s1018_s13, %s1019_s14  ;;  %p1025_p7 = scmp.lt.s32.totalorder %s1018_s13, %s1250_s0 }
  0x1b   : > { %p1026_p8 = scmp.lt.s32.totalorder %s1024_s17, %s1019_s14 }
  0x1c   : > { %p1022_p3 = pnand %p1021_p2, %p1020_p0 }
  0x1d   : > { %p1027_p9 = por %p1026_p8, %p1025_p7 }
  0x1e   : > { %p1023_p6 = pneg %p1022_p3 }
  0x20   : > { %p1028_p10 = pnand %p1027_p9, %p1023_p6 }
  0x22   : > { %1031 = shalt.err (!%p1028_p10)
}
  0x23   : > { %s1091_s19 = smov 128   ;;  %s1092_s27 = smov 8  }
  0x24   : > { %913 = dma.hbm_to_vmem [thread:$0]  (!%p1191_p13), %s250_s8, 256, %s252_s10, %s240_s12, %s1091_s19, %s1091_s19, %s1092_s27  }
  0x25   : > { %263 = sbr.rel (%p1162_p5) target bundleno = 223 (0xdf), region = 32  ;;  %s265_s28 = sand.u32 (!%p1162_p5), 1, %s1077_s22  }
  0x26   : > { %s795_s29 = sshll.u32 (!%p1162_p5), %s265_s28, 4  ;;  %s266_s7 = scalar_lea.sflag (!%p1162_p5), [#allocation3], %s265_s28 }
  0x27   : > { %s269_s9 = scalar_lea.vmem (!%p1162_p5), [#allocation2], %s795_s29 }
  0x2a   : > { %1064 = dma.done.wait (%p1155_p4), %s266_s7, 256  }
  0x2b   : > { %1066 = vsyncadd (%p1155_p4), %s266_s7, 4294967040 }
  0x2c   : > { %1068 = dma.done.wait (%p42_p1), [#allocation5], 2048  }
  0x2d   : > { %1070 = vsyncadd (%p42_p1), [#allocation5], 4294965248  ;;  %v884_v0 = vld [vmem:[#allocation4 + $0x38] sm:$0xff]  ;;  %v883_v4 = vld [vmem:[#allocation4 + $0x30] sm:$0xff]  ;;  %vm358_vm0 = vcmask 1040384   ;;  %vm365_vm2 = vcmask 1047552  }
  0x2e   : > { %v880_v1 = vld [vmem:[#allocation4 + $0x18] sm:$0xff]  ;;  %416 = vmatpush.bf16.msra.mxu0 %v884_v0  ;;  %v879_v5 = vld [vmem:[#allocation4 + $0x10] sm:$0xff]  ;;  %v882_v10 = vld [vmem:[#allocation4 + $0x28] sm:$0xff]  ;;  %vm359_vm1 = vsmask.f32 256  ;;  %vm409_vm4 = vcmask 523264  }
  0x2f   : > { %v888_v2 = vld [vmem:[#allocation4 + $0x58] sm:$0xff]  ;;  %457 = vmatpush.bf16.msra.mxu1 %v880_v1  ;;  %v887_v6 = vld [vmem:[#allocation4 + $0x50] sm:$0xff]  ;;  %v878_v11 = vld [vmem:[#allocation4 + $0x8] sm:$0xff]  ;;  %vm366_vm3 = vsmask.f32 7424  ;;  %p322_p1 = scmp.lt.s32.totalorder %s1147_s25, 1 }
  0x30   : > { %v892_v3 = vld [vmem:[#allocation6 + $0x18] sm:$0xff]  ;;  %506 = vmatpush.bf16.msra.mxu2 %v888_v2  ;;  %v891_v7 = vld [vmem:[#allocation6 + $0x10] sm:$0xff]  ;;  %v886_v14 = vld [vmem:[#allocation4 + $0x48] sm:$0xff] }
  0x31   : > { %554 = vmatpush.bf16.msra.mxu3 %v892_v3  ;;  %v341_v8 = vld [vmem:[%s269_s9] sm:$0xff]  ;;  %v342_v9 = vld [vmem:[%s269_s9 + $0x8] sm:$0xff]  ;;  %vm360_vm5 = vmand %vm358_vm0, %vm359_vm1  ;;  %s1265_s25 = smov (!%p322_p1, %s1147_s25), 1 }
  0x32   : > { %417 = vmatpush.bf16.msra.mxu0 %v883_v4  ;;  %v343_v12 = vpack.c.bf16 %v341_v8, %v341_v8  ;;  %v344_v13 = vpack.c.bf16 %v342_v9, %v342_v9  ;;  %v890_v15 = vld [vmem:[#allocation6 + $0x8] sm:$0xff]  ;;  %v881_v18 = vld [vmem:[#allocation4 + $0x20] sm:$0xff]  ;;  %vm367_vm6 = vmand %vm365_vm2, %vm366_vm3  ;;  %s875_s26 = sshll.u32 %s1265_s25, 4  ;;  %s802_s14 = sshll.u32 %s1265_s25, 1 }
  0x33   : > { %458 = vmatpush.bf16.msra.mxu1 %v879_v5  ;;  %v877_v19 = vld [vmem:[#allocation4] sm:$0xff]  ;;  %s331_s10 = scalar_lea.vmem %s1254_s4, %s875_s26  ;;  %s326_s13 = scalar_lea.vmem %s1253_s3, %s875_s26 }
  0x34   : > { %507 = vmatpush.bf16.msra.mxu2 %v887_v6  ;;  %v347_v16 = vunpack.c.l.b16 %v343_v12  ;;  %v348_v17 = vunpack.c.l.b16 %v344_v13  ;;  %v885_v21 = vld [vmem:[#allocation4 + $0x40] sm:$0xff]  ;;  %s339_s17 = scalar_lea.vmem %s1256_s6, %s802_s14  ;;  %s335_s19 = scalar_lea.vmem %s1255_s5, %s802_s14 }
  0x35   : > { %555 = vmatpush.bf16.msra.mxu3 %v891_v7  ;;  %v889_v22 = vld [vmem:[#allocation6] sm:$0xff] }
  0x36   : > { %418 = vmatpush.bf16.msra.mxu0 %v882_v10  ;;  %v349_v20 = vpack.c.b16 %v348_v17, %v347_v16 }
  0x37   : > { %459 = vmatpush.bf16.msra.mxu1 %v878_v11 }
  0x38   : > { %508 = vmatpush.bf16.msra.mxu2 %v886_v14  ;;  %v351_v23 = vshrl.u32 %v349_v20, 16  ;;  %v354_v24 = vshll.u32 %v349_v20, 16 }
  0x39   : > { %556 = vmatpush.bf16.msra.mxu3 %v890_v15 }
  0x3a   : > { %419 = vmatpush.bf16.msra.mxu0 %v881_v18  ;;  %v353_v25 = vrot.slane %v351_v23, 7  ;;  %v362_v26 = vrot.slane %v354_v24, 1 }
  0x3b   : > { %460 = vmatpush.bf16.msra.mxu1 %v877_v19 }
  0x3c   : > { %509 = vmatpush.bf16.msra.mxu2 %v885_v21  ;;  %v356_v27 = vor.u32 %v354_v24, %v353_v25  ;;  %v363_v28 = vor.u32 %v362_v26, %v351_v23 }
  0x3d   : > { %557 = vmatpush.bf16.msra.mxu3 %v889_v22  ;;  %820 = vmatmul.msk.bf16.vlgmr.msra.gmra.mxu0 %vm409_vm4, %v349_v20 }
  0x3e   : > { %v361_v29 = vsel %vm360_vm5, 0, %v356_v27  ;;  %v368_v30 = vsel %vm367_vm6, %v363_v28, 0 }
  0x3f   : > { %837 = vmatmul.msk.bf16.vlgmr.msra.gmra.mxu1 %vm409_vm4, %v361_v29  ;;  %854 = vmatmul.msk.bf16.vlgmr.msra.gmra.mxu2 %vm409_vm4, %v368_v30 }
  0x40   : > { %871 = vmatmul.msk.bf16.vlgmr.msra.gmra.mxu3 %vm409_vm4, %v349_v20 }
  0xba   : > { %v421_v31 = vpop.f32.mrf.mxu0 }
  0xbc   : > { %v462_v32 = vpop.f32.mrf.mxu1 }
  0xbd   : > { %v463_v33 = vadd.f32 %v462_v32, %v421_v31 }
  0xc2   : > { %v511_v35 = vpop.f32.mrf.mxu2  ;;  %v423_v37 = vpop.f32.mrf.mxu0 }
  0xc3   : > { %v559_v34 = vpop.f32.mrf.mxu3  ;;  %v516_v36 = vadd.f32 %v511_v35, %v463_v33 }
  0xc4   : > { %566 = vst [vmem:[%s331_s10] sm:$0xff] %v559_v34  ;;  %v464_v38 = vpop.f32.mrf.mxu1  ;;  %v594_v41 = vmul.f32 %v559_v34, %v559_v34 }
  0xc5   : > { %564 = vst [vmem:[%s326_s13] sm:$0xff] %v516_v36  ;;  %v465_v39 = vadd.f32 %v464_v38, %v423_v37  ;;  %v575_v48 = vmul.f32 %v516_v36, %v516_v36 }
  0xca   : > { %v513_v42 = vpop.f32.mrf.mxu2 }
  0xcb   : > { %v561_v40 = vpop.f32.mrf.mxu3  ;;  %v517_v45 = vadd.f32 %v513_v42, %v465_v39 }
  0xcc   : > { %567 = vst [vmem:[%s331_s10 + $0x8] sm:$0xff] %v561_v40  ;;  %v587_v43 = vadd.f32 %v561_v40, %v559_v34  ;;  %v595_v44 = vmul.f32 %v561_v40, %v561_v40 }
  0xcd   : > { %565 = vst [vmem:[%s326_s13 + $0x8] sm:$0xff] %v517_v45  ;;  %v568_v49 = vadd.f32 %v517_v45, %v516_v36  ;;  %v576_v50 = vmul.f32 %v517_v45, %v517_v45 }
  0xce   : > { %v588_v46 = vrot.slane %v587_v43, 4  ;;  %v596_v47 = vadd.f32 %v595_v44, %v594_v41 }
  0xcf   : > { %v569_v53 = vrot.slane %v568_v49, 4  ;;  %v577_v54 = vadd.f32 %v576_v50, %v575_v48 }
  0xd0   : > { %v589_v51 = vadd.f32 %v588_v46, %v587_v43  ;;  %v597_v52 = vrot.slane %v596_v47, 4 }
  0xd1   : > { %v570_v57 = vadd.f32 %v569_v53, %v568_v49  ;;  %v578_v58 = vrot.slane %v577_v54, 4 }
  0xd2   : > { %v590_v55 = vrot.slane %v589_v51, 2  ;;  %v598_v56 = vadd.f32 %v597_v52, %v596_v47 }
  0xd3   : > { %v571_v61 = vrot.slane %v570_v57, 2  ;;  %v579_v62 = vadd.f32 %v578_v58, %v577_v54 }
  0xd4   : > { %v591_v59 = vadd.f32 %v590_v55, %v589_v51  ;;  %v599_v60 = vrot.slane %v598_v56, 2 }
  0xd5   : > { %v572_v1 = vadd.f32 %v571_v61, %v570_v57  ;;  %v580_v2 = vrot.slane %v579_v62, 2 }
  0xd6   : > { %v592_v63 = vrot.slane %v591_v59, 1  ;;  %v600_v0 = vadd.f32 %v599_v60, %v598_v56 }
  0xd7   : > { %v573_v4 = vrot.slane %v572_v1, 1  ;;  %v581_v5 = vadd.f32 %v580_v2, %v579_v62 }
  0xd8   : > { %v601_v3 = vrot.slane %v600_v0, 1  ;;  %v593_v6 = vadd.f32 %v592_v63, %v591_v59 }
  0xd9   : > { %v582_v8 = vrot.slane %v581_v5, 1  ;;  %v574_v10 = vadd.f32 %v573_v4, %v572_v1 }
  0xda   : > { %v602_v7 = vadd.f32 %v601_v3, %v600_v0 }
  0xdb   : > { %v583_v11 = vadd.f32 %v582_v8, %v581_v5 }
  0xdc   : > { %v603_v9 = vsel %vm358_vm0, %v593_v6, %v602_v7 }
  0xdd   : > { %604 = vst [vmem:[%s339_s17] sm:$0x3] %v603_v9  ;;  %v585_v12 = vsel %vm358_vm0, %v574_v10, %v583_v11 }
  0xde   : > { %586 = vst [vmem:[%s335_s19] sm:$0x3] %v585_v12 }
  0xdf PF: > { %p18_p4 = scmp.ge.s32.totalorder %s1174_s16, 4   ;;  %s1260_s21 = smov %s1077_s22 }
  0xe0   : > { %s1261_s22 = smov %s1081_s23  ;;  %s1262_s23 = smov %s1185_s20 }
  0xe1   : > { %s1263_s24 = smov %s1174_s16  ;;  %20 = sbr.rel (!%p18_p4) target bundleno = 4 (0x4), region = 116 }
  0xe6   :  { %670 = vsyncpa [#allocation3], 1 }
  0xe7   :  { %672 = vsyncpa [#allocation3 + $0x1], 1 }
  0xe8   :  { %673 = vsyncpa [#allocation5], 1 }

// kernel: resblock_forward_lane.4
= control target key start
LH: loop header
LB: loop body
LE: loop exit
PB: predicated region body
PF: predicated region fallthrough
CT: control target
= control target key end

     0   :  { %11 = vsyncpa [#allocation3], 0  ;;  %s886_s18 = smov 0   ;;  %s925_s0 = inlined_call_operand.vmem [shape: f32[2,16,128], index: 0, kind: input, shape index: {}]   ;;  %s926_s1 = inlined_call_operand.vmem [shape: f32[1,128], index: 1, kind: input, shape index: {}]   ;;  %s927_s2 = inlined_call_operand.vmem [shape: f32[1,128], index: 2, kind: input, shape index: {}]   ;;  %s928_s3 = inlined_call_operand.hbm [shape: bf16[384,128], index: 3, kind: input, shape index: {}]   ;;  %s929_s4 = inlined_call_operand.vmem [shape: f32[2,16,128], index: 4, kind: output, shape index: {0}]   ;;  %s930_s5 = inlined_call_operand.vmem [shape: f32[2,2,128], index: 5, kind: output, shape index: {1}]  }
   0x1 LB: > { %s180_s21 = sshll.u32 %s928_s3, 4  ;;  %s652_s22 = sadd.s32 4294967295, %s851_s18   ;;  %s851_s18 = sphi %s886_s18, %s17_s18   ;;  %s181_s21 = int_to_ptr.hbm [resolvable:$true] %s180_s21 }
   0x2   : > { %p654_p0 = scmp.ge.s32.totalorder %s851_s18, 1  ;;  %p163_p1 = scmp.lt.s32.totalorder %s851_s18, 3 }
   0x3   : > { %p796_p2 = scmp.eq.s32.totalorder %s652_s22, 0  ;;  %s853_s23 = smov [#allocation2]  }
   0x4   : > { %p164_p3 = pnand %p654_p0, %p163_p1  ;;  %s182_s24 = sshll.u32 %s853_s23, 4  ;;  %s183_s24 = int_to_ptr.vmem [resolvable:$true] %s182_s24 }
   0x5   : > { %s854_s25 = smov 64   ;;  %s855_s26 = smov 4  }
   0x6   : > { %p792_p4 = pneg %p164_p3  ;;  %206 = sbr.rel (%p164_p3) target bundleno = 206 (0xce), region = 36 }
   0x8   : > { %p793_p5 = pnand %p796_p2, %p792_p4 }
   0xa   : > { %795 = dma.hbm_to_vmem [thread:$0]  (!%p793_p5), %s181_s21, 3072, %s183_s24, [#allocation3], %s854_s25, %s854_s25, %s855_s26  }
   0xb   : > { %846 = dma.done.wait (%p796_p2), [#allocation3], 3072  }
   0xc   : > { %848 = vsyncadd (%p796_p2), [#allocation3], 4294964224  ;;  %p239_p6 = scmp.lt.s32.totalorder %s652_s22, 1  ;;  %v779_v0 = vld [vmem:[#allocation2 + $0x78] sm:$0xff]  ;;  %v778_v3 = vld [vmem:[#allocation2 + $0x70] sm:$0xff]  ;;  %vm285_vm0 = vcmask 1040384  }
   0xd   : > { %v771_v1 = vld [vmem:[#allocation2 + $0x38] sm:$0xff]  ;;  %377 = vmatpush.bf16.msra.mxu0 %v779_v0  ;;  %v770_v4 = vld [vmem:[#allocation2 + $0x30] sm:$0xff]  ;;  %v777_v6 = vld [vmem:[#allocation2 + $0x68] sm:$0xff]  ;;  %vm286_vm1 = vsmask.f32 256  ;;  %vm292_vm2 = vcmask 1047552  }
   0xe   : > { %s932_s22 = smov (!%p239_p6, %s652_s22), 1  ;;  %v787_v2 = vld [vmem:[#allocation2 + $0xb8] sm:$0xff]  ;;  %439 = vmatpush.bf16.msra.mxu1 %v771_v1  ;;  %v786_v5 = vld [vmem:[#allocation2 + $0xb0] sm:$0xff]  ;;  %v769_v7 = vld [vmem:[#allocation2 + $0x28] sm:$0xff]  ;;  %vm293_vm3 = vsmask.f32 7424 }
   0xf   : > { %s762_s27 = sshll.u32 %s932_s22, 4  ;;  %517 = vmatpush.bf16.msra.mxu2 %v787_v2  ;;  %v785_v8 = vld [vmem:[#allocation2 + $0xa8] sm:$0xff]  ;;  %v809_v11 = vld [vmem:[%s926_s1] ss:$0 sm:$0xff]  ;;  %v775_v20 = vld [vmem:[#allocation2 + $0x58] sm:$0xff]  ;;  %s663_s13 = sshll.u32 %s932_s22, 1 }
  0x10   : > { %s243_s30 = scalar_lea.vmem %s925_s0, %s762_s27  ;;  %v810_v12 = vld [vmem:[%s927_s2] ss:$0 sm:$0xff]  ;;  %v767_v21 = vld [vmem:[#allocation2 + $0x18] sm:$0xff]  ;;  %v774_v27 = vld [vmem:[#allocation2 + $0x50] sm:$0xff]  ;;  %s248_s12 = scalar_lea.vmem %s929_s4, %s762_s27 }
  0x11   : > { %378 = vmatpush.bf16.msra.mxu0 %v778_v3  ;;  %v254_v9 = vld [vmem:[%s243_s30] sm:$0xff]  ;;  %v255_v10 = vld [vmem:[%s243_s30 + $0x8] sm:$0xff]  ;;  %v783_v22 = vld [vmem:[#allocation2 + $0x98] sm:$0xff]  ;;  %s252_s16 = scalar_lea.vmem %s930_s5, %s663_s13 }
  0x12   : > { %440 = vmatpush.bf16.msra.mxu1 %v770_v4  ;;  %v776_v13 = vld [vmem:[#allocation2 + $0x60] sm:$0xff]  ;;  %v260_v16 = vmul.f32 %v809_v11, %v254_v9  ;;  %v261_v17 = vmul.f32 %v809_v11, %v255_v10  ;;  %v766_v28 = vld [vmem:[#allocation2 + $0x10] sm:$0xff]  ;;  %v773_v33 = vld [vmem:[#allocation2 + $0x48] sm:$0xff] }
  0x13   : > { %518 = vmatpush.bf16.msra.mxu2 %v786_v5  ;;  %v768_v14 = vld [vmem:[#allocation2 + $0x20] sm:$0xff]  ;;  %v782_v29 = vld [vmem:[#allocation2 + $0x90] sm:$0xff]  ;;  %v765_v34 = vld [vmem:[#allocation2 + $0x8] sm:$0xff] }
  0x14   : > { %v784_v15 = vld [vmem:[#allocation2 + $0xa0] sm:$0xff]  ;;  %v266_v18 = vadd.f32 %v810_v12, %v260_v16  ;;  %v267_v19 = vadd.f32 %v810_v12, %v261_v17  ;;  %v781_v35 = vld [vmem:[#allocation2 + $0x88] sm:$0xff]  ;;  %vm287_vm4 = vmand %vm285_vm0, %vm286_vm1 }
  0x15   : > { %379 = vmatpush.bf16.msra.mxu0 %v777_v6  ;;  %v772_v40 = vld [vmem:[#allocation2 + $0x40] sm:$0xff]  ;;  %vm294_vm5 = vmand %vm292_vm2, %vm293_vm3 }
  0x16   : > { %441 = vmatpush.bf16.msra.mxu1 %v769_v7  ;;  %v268_v23 = vmax.f32 %v266_v18, 0.0  ;;  %v269_v24 = vmax.f32 %v267_v19, 0.0  ;;  %v764_v41 = vld [vmem:[#allocation2] sm:$0xff] }
  0x17   : > { %519 = vmatpush.bf16.msra.mxu2 %v785_v8  ;;  %v780_v42 = vld [vmem:[#allocation2 + $0x80] sm:$0xff] }
  0x18   : > { %v270_v25 = vpack.c.bf16 %v268_v23, %v268_v23  ;;  %v271_v26 = vpack.c.bf16 %v269_v24, %v269_v24 }
  0x19   : > { %380 = vmatpush.bf16.msra.mxu0 %v776_v13 }
  0x1a   : > { %442 = vmatpush.bf16.msra.mxu1 %v768_v14  ;;  %v274_v30 = vunpack.c.l.b16 %v270_v25  ;;  %v275_v31 = vunpack.c.l.b16 %v271_v26 }
  0x1b   : > { %520 = vmatpush.bf16.msra.mxu2 %v784_v15 }
  0x1c   : > { %v276_v32 = vpack.c.b16 %v275_v31, %v274_v30 }
  0x1d   : > { %381 = vmatpush.bf16.msra.mxu0 %v775_v20 }
  0x1e   : > { %443 = vmatpush.bf16.msra.mxu1 %v767_v21  ;;  %v278_v36 = vshrl.u32 %v276_v32, 16  ;;  %v281_v37 = vshll.u32 %v276_v32, 16 }
  0x1f   : > { %521 = vmatpush.bf16.msra.mxu2 %v783_v22 }
  0x20   : > { %v280_v38 = vrot.slane %v278_v36, 7  ;;  %v289_v39 = vrot.slane %v281_v37, 1 }
  0x21   : > { %382 = vmatpush.bf16.msra.mxu0 %v774_v27 }
  0x22   : > { %444 = vmatpush.bf16.msra.mxu1 %v766_v28  ;;  %v283_v43 = vor.u32 %v281_v37, %v280_v38  ;;  %v290_v44 = vor.u32 %v289_v39, %v278_v36 }
  0x23   : > { %522 = vmatpush.bf16.msra.mxu2 %v782_v29 }
  0x24   : > { %v288_v45 = vsel %vm287_vm4, 0, %v283_v43  ;;  %v295_v46 = vsel %vm294_vm5, %v290_v44, 0 }
  0x25   : > { %383 = vmatpush.bf16.msra.mxu0 %v773_v33 }
  0x26   : > { %445 = vmatpush.bf16.msra.mxu1 %v765_v34 }
  0x27   : > { %523 = vmatpush.bf16.msra.mxu2 %v781_v35 }
  0x29   : > { %384 = vmatpush.bf16.msra.mxu0 %v772_v40 }
  0x2a   : > { %446 = vmatpush.bf16.msra.mxu1 %v764_v41 }
  0x2b   : > { %524 = vmatpush.bf16.msra.mxu2 %v780_v42 }
  0x2c   : > { %385 = vmatmul.bf16.vlgmr.msra.gmra.mxu0 %v276_v32 }
  0x2d   : > { %447 = vmatmul.bf16.vlgmr.msra.gmra.mxu1 %v288_v45 }
  0x2e   : > { %525 = vmatmul.bf16.vlgmr.msra.gmra.mxu2 %v295_v46 }
  0xa9   : > { %v386_v47 = vpop.f32.mrf.mxu0 }
  0xaa   : > { %v448_v48 = vpop.f32.mrf.mxu1 }
  0xab   : > { %v449_v49 = vadd.f32 %v448_v48, %v386_v47 }
  0xb1   : > { %v526_v50 = vpop.f32.mrf.mxu2  ;;  %v388_v52 = vpop.f32.mrf.mxu0 }
  0xb2   : > { %v531_v51 = vadd.f32 %v526_v50, %v449_v49  ;;  %v450_v53 = vpop.f32.mrf.mxu1 }
  0xb3   : > { %v451_v54 = vadd.f32 %v450_v53, %v388_v52 }
  0xb4   : > { %533 = vst [vmem:[%s248_s12] sm:$0xff] %v531_v51  ;;  %v542_v57 = vmul.f32 %v531_v51, %v531_v51 }
  0xb9   : > { %v528_v55 = vpop.f32.mrf.mxu2 }
  0xba   : > { %v532_v56 = vadd.f32 %v528_v55, %v451_v54 }
  0xbc   : > { %534 = vst [vmem:[%s248_s12 + $0x8] sm:$0xff] %v532_v56  ;;  %v535_v58 = vadd.f32 %v532_v56, %v531_v51  ;;  %v543_v59 = vmul.f32 %v532_v56, %v532_v56 }
  0xbe   : > { %v536_v60 = vrot.slane %v535_v58, 4  ;;  %v544_v61 = vadd.f32 %v543_v59, %v542_v57 }
  0xc0   : > { %v537_v62 = vadd.f32 %v536_v60, %v535_v58  ;;  %v545_v63 = vrot.slane %v544_v61, 4 }
  0xc2   : > { %v538_v0 = vrot.slane %v537_v62, 2  ;;  %v546_v1 = vadd.f32 %v545_v63, %v544_v61 }
  0xc4   : > { %v539_v2 = vadd.f32 %v538_v0, %v537_v62  ;;  %v547_v3 = vrot.slane %v546_v1, 2 }
  0xc6   : > { %v540_v4 = vrot.slane %v539_v2, 1  ;;  %v548_v5 = vadd.f32 %v547_v3, %v546_v1 }
  0xc8   : > { %v549_v6 = vrot.slane %v548_v5, 1  ;;  %v541_v7 = vadd.f32 %v540_v4, %v539_v2 }
  0xca   : > { %v550_v8 = vadd.f32 %v549_v6, %v548_v5 }
  0xcc   : > { %v552_v9 = vsel %vm285_vm0, %v541_v7, %v550_v8 }
  0xcd   : > { %553 = vst [vmem:[%s252_s16] sm:$0x3] %v552_v9 }
  0xce PF: > { %s17_s18 = sadd.s32 1, %s851_s18  }
  0xcf   : > { %p14_p7 = scmp.ge.s32.totalorder %s17_s18, 4  }
  0xd1   :  { %16 = sbr.rel (!%p14_p7) target bundleno = 1 (0x1), region = 83 }
  0xd6   :  { %589 = vsyncpa [#allocation3], 1 }
  0xd7   :  { %591 = vsyncpa [#allocation3 + $0x1], 1 }

</bundles_post_ra>
